<compile_context>
chip_gen: v7x
topology: tpu7x:2x2x1
jax: 0.10.0
libtpu: 0.0.40
codegen_flags: <defaults>
</compile_context>

<pallas_src>
import functools

import jax
import jax.numpy as jnp
from jax.experimental import pallas as pl
from jax.experimental.pallas import tpu as pltpu


def _round_up(v: int, m: int) -> int:
    return ((v + m - 1) // m) * m


def _final_layer_kernel(x_ref, shift_ref, scale1_ref, w_lin_ref, b_lin_ref,
                        o_ref, *, eps: float):
    # x_ref:      (1, TILE_T, H)
    # shift_ref:  (1, 1, H)        -- adaLN shift, already in compute dtype
    # scale1_ref: (1, 1, H)        -- 1 + adaLN scale, already in compute dtype
    # w_lin_ref:  (H, OUT_PAD)
    # b_lin_ref:  (1, OUT_PAD)
    # o_ref:      (1, TILE_T, OUT_PAD)
    x = x_ref[0].astype(jnp.float32)               # (TILE_T, H)
    h = x.shape[-1]
    inv_h = 1.0 / h

    # Fused LayerNorm statistics (single pass); clamp var >= 0 for stability.
    s = jnp.sum(x, axis=-1, keepdims=True)         # (TILE_T, 1)
    ss = jnp.sum(x * x, axis=-1, keepdims=True)    # (TILE_T, 1)
    mean = s * inv_h
    var = jnp.maximum(ss * inv_h - mean * mean, 0.0)
    x_norm = (x - mean) * jax.lax.rsqrt(var + eps)

    # Modulate in the compute (= weight) dtype.  With bf16 weights this keeps
    # the VPU ops packed (v6e/v7x win); with f32 weights it is exactly the
    # previous f32 path.
    cdt = w_lin_ref.dtype
    x_mod = x_norm.astype(cdt) * scale1_ref[0] + shift_ref[0]   # (TILE_T, H)

    # Final projection on the MXU, f32 accumulation.
    out = jnp.dot(x_mod, w_lin_ref[...], preferred_element_type=jnp.float32)
    out = out + b_lin_ref[...].astype(jnp.float32)

    o_ref[0] = out.astype(o_ref.dtype)


def final_layer(x, c, w_ada, b_ada, w_lin, b_lin, *, eps: float = 1e-6,
                tile_t: int | None = None, out_dtype=None,
                return_padded: bool = False):
    """FinalLayer forward.

    x: (B, T, H), c: (B, H)
    w_ada: (H, 2H), b_ada: (2H,)   -- adaLN_modulation Linear (stored as in,out)
    w_lin: (H, OUT), b_lin: (OUT,) -- final Linear (stored as in,out)
    Pass bf16 w_lin/b_lin for the fast MXU / half-traffic path.
    Returns (B, T, OUT)  (or (B, T, OUT_PAD) if return_padded=True).
    """
    B, T, H = x.shape
    OUT = w_lin.shape[1]
    out_dtype = x.dtype if out_dtype is None else out_dtype

    # ---- Hoisted adaLN branch: swish(c) @ W_ada + b_ada -> shift, 1 + scale ----
    c32 = c.astype(jnp.float32)
    swish_c = c32 * jax.nn.sigmoid(c32)                                    # (B, H)
    ada = swish_c @ w_ada.astype(jnp.float32) + b_ada.astype(jnp.float32)  # (B, 2H)
    shift = ada[:, :H].reshape(B, 1, H)
    scale1 = (1.0 + ada[:, H:]).reshape(B, 1, H)

    # ---- Lane-dense output: pad OUT up to a multiple of 128 ----
    # NOTE: under jit this pad constant-folds; ideally hoist it to param init.
    OUT_PAD = _round_up(OUT, 128)
    if OUT_PAD != OUT:
        w_lin_p = jnp.pad(w_lin, ((0, 0), (0, OUT_PAD - OUT)))
        b_lin_p = jnp.pad(b_lin, ((0, OUT_PAD - OUT),))
    else:
        w_lin_p, b_lin_p = w_lin, b_lin
    b_lin_p = b_lin_p.reshape(1, OUT_PAD)

    compute_dtype = w_lin_p.dtype
    shift_c = shift.astype(compute_dtype)
    scale1_c = scale1.astype(compute_dtype)

    x_item = jnp.dtype(x.dtype).itemsize
    w_item = jnp.dtype(compute_dtype).itemsize
    o_item = jnp.dtype(out_dtype).itemsize

    def _footprint(tt: int) -> int:
        return (2 * tt * H * x_item           # double-buffered x tiles
                + 3 * tt * H * 4              # f32 intermediates (x, x_norm, x_mod)
                + 2 * H * OUT_PAD * w_item    # W_lin (worst case: double-buffered)
                + 2 * tt * OUT_PAD * o_item   # double-buffered output tiles
                + 8 * H * w_item              # shift / scale1 / bias
                + (1 << 20))                  # compiler-internal slack

    # ---- Generation-aware VMEM budget ----
    try:
        vmem_cap = int(getattr(pltpu.get_tpu_info(), "vmem_capacity_bytes",
                               64 << 20))
    except Exception:
        vmem_cap = 64 << 20                   # conservative: v7x has 64 MiB / TC

    # ---- Token tiling ----
    if tile_t is None:
        budget = int(vmem_cap * 0.7)
        TILE_T = 8
        for tt in (1024, 512, 256, 128, 64, 32, 16, 8):
            if _footprint(tt) <= budget:
                TILE_T = tt
                break
    else:
        TILE_T = max(8, (tile_t // 8) * 8)    # multiple of 8
    if TILE_T >= T:
        TILE_T = T                            # full axis is always a legal block
    n_t = pl.cdiv(T, TILE_T)

    # Megacore occupancy (v7x: 2 TCs) -- avoid a single-step grid when splittable.
    if B * n_t < 2 and T >= 16:
        TILE_T = _round_up(pl.cdiv(T, 2), 8)
        n_t = pl.cdiv(T, TILE_T)

    vmem_limit = int(min(max(_footprint(TILE_T) * 3 // 2, 32 << 20), vmem_cap))

    kernel = functools.partial(_final_layer_kernel, eps=eps)

    cost = pl.CostEstimate(
        flops=2 * B * T * H * OUT_PAD + 8 * B * T * H,
        transcendentals=B * T,
        bytes_accessed=(B * T * H * x_item + B * T * OUT_PAD * o_item
                        + H * OUT_PAD * w_item),
    )

    buffered_cls = getattr(pl, "Buffered", None)

    def _call(single_buffer_invariants: bool):
        kw = {}
        if single_buffer_invariants and buffered_cls is not None:
            kw = dict(pipeline_mode=buffered_cls(1))
        in_specs = [
            pl.BlockSpec((1, TILE_T, H), lambda b, t: (b, t, 0)),        # x tile
            pl.BlockSpec((1, 1, H), lambda b, t: (b, 0, 0), **kw),       # shift
            pl.BlockSpec((1, 1, H), lambda b, t: (b, 0, 0), **kw),       # 1+scale
            pl.BlockSpec((H, OUT_PAD), lambda b, t: (0, 0), **kw),       # W_lin
            pl.BlockSpec((1, OUT_PAD), lambda b, t: (0, 0), **kw),       # b_lin
        ]
        out_spec = pl.BlockSpec((1, TILE_T, OUT_PAD), lambda b, t: (b, t, 0))
        return pl.pallas_call(
            kernel,
            out_shape=jax.ShapeDtypeStruct((B, T, OUT_PAD), out_dtype),
            grid_spec=pltpu.PrefetchScalarGridSpec(
                num_scalar_prefetch=0,
                grid=(B, n_t),
                in_specs=in_specs,
                out_specs=out_spec,
            ),
            compiler_params=pltpu.CompilerParams(
                dimension_semantics=("parallel", "parallel"),
                vmem_limit_bytes=vmem_limit),
            cost_estimate=cost,
        )(x, shift_c, scale1_c, w_lin_p, b_lin_p)

    try:
        out_padded = _call(True)
    except Exception:
        # Fall back to default double-buffering if Buffered(1) is unsupported.
        out_padded = _call(False)

    if return_padded or OUT_PAD == OUT:
        return out_padded
    # TODO(synk): fold this OUT_PAD->OUT slice into the downstream unpatchify
    # reshape (use return_padded=True) to drop one full HBM pass.
    return out_padded[..., :OUT]


def final_layer_ref(x, c, w_ada, b_ada, w_lin, b_lin, eps=1e-6):
    """Pure-JAX reference matching the PyTorch module."""
    swish_c = c * jax.nn.sigmoid(c)
    ada = swish_c @ w_ada + b_ada                       # (B, 2H)
    H = x.shape[-1]
    shift, scale = ada[:, :H], ada[:, H:]
    mean = jnp.mean(x, axis=-1, keepdims=True)
    var = jnp.mean((x - mean) ** 2, axis=-1, keepdims=True)
    xn = (x - mean) / jnp.sqrt(var + eps)
    xm = xn * (1.0 + scale[:, None, :]) + shift[:, None, :]
    return xm @ w_lin + b_lin


if __name__ == "__main__":
    # Small synthetic config consistent with FinalLayer(hidden_size, patch_size, out_channels).
    B, T = 2, 8
    hidden_size = 32
    patch_size = 2
    out_channels = 4
    OUT = patch_size * patch_size * out_channels  # 16

    key = jax.random.PRNGKey(0)
    kx, kc, k1, k2, k3, k4 = jax.random.split(key, 6)

    x = jax.random.normal(kx, (B, T, hidden_size), dtype=jnp.float32)
    c = jax.random.normal(kc, (B, hidden_size), dtype=jnp.float32)

    # Parameters stored as (in, out) so kernel/wrapper do x @ W.
    w_ada = 0.02 * jax.random.normal(k1, (hidden_size, 2 * hidden_size), dtype=jnp.float32)
    b_ada = 0.01 * jax.random.normal(k2, (2 * hidden_size,), dtype=jnp.float32)
    w_lin = 0.02 * jax.random.normal(k3, (hidden_size, OUT), dtype=jnp.float32)
    b_lin = 0.01 * jax.random.normal(k4, (OUT,), dtype=jnp.float32)

    ref = final_layer_ref(x, c, w_ada, b_ada, w_lin, b_lin)

    # f32 weights: exact path, tight tolerance.
    out = final_layer(x, c, w_ada, b_ada, w_lin, b_lin)
    out = jax.block_until_ready(out)
    assert out.shape == (B, T, OUT)
    assert jnp.allclose(out, ref, atol=1e-5, rtol=1e-5), "f32 mismatch vs reference"

    # bf16 weights: fast MXU path, loose tolerance.
    out_bf16 = final_layer(x, c, w_ada, b_ada,
                           w_lin.astype(jnp.bfloat16), b_lin.astype(jnp.bfloat16))
    out_bf16 = jax.block_until_ready(out_bf16)
    assert out_bf16.shape == (B, T, OUT)
    assert jnp.allclose(out_bf16.astype(jnp.float32), ref, atol=3e-2, rtol=3e-2), \
        "bf16 mismatch vs reference"

    print("KERNEL_OK")
</pallas_src>

<mosaic_0001>
module attributes {stable_mosaic.version = 11 : i64} {
  func.func @_final_layer_kernel(%arg0: i32, %arg1: i32, %arg2: memref<1x8x32xf32, #tpu.memory_space<vmem>>, %arg3: memref<1x1x32xf32, #tpu.memory_space<vmem>>, %arg4: memref<1x1x32xf32, #tpu.memory_space<vmem>>, %arg5: memref<32x128xf32, #tpu.memory_space<vmem>>, %arg6: memref<1x128xf32, #tpu.memory_space<vmem>>, %arg7: memref<1x8x128xf32, #tpu.memory_space<vmem>>) attributes {dimension_semantics = [#tpu.dimension_semantics<parallel>, #tpu.dimension_semantics<parallel>], iteration_bounds = array<i64: 2, 1>, scalar_prefetch = 0 : i64, scratch_operands = 0 : i64, tpu.core_type = #tpu.core_type<tc>, window_params = [{transform_indices = @transform_0, window_bounds = array<i64: 1, 8, 32>}, {pipeline_mode = #tpu.pipeline_mode<synchronous>, transform_indices = @transform_1, window_bounds = array<i64: 1, 1, 32>}, {pipeline_mode = #tpu.pipeline_mode<synchronous>, transform_indices = @transform_2, window_bounds = array<i64: 1, 1, 32>}, {pipeline_mode = #tpu.pipeline_mode<synchronous>, transform_indices = @transform_3, window_bounds = array<i64: 32, 128>}, {pipeline_mode = #tpu.pipeline_mode<synchronous>, transform_indices = @transform_4, window_bounds = array<i64: 1, 128>}, {transform_indices = @transform_5, window_bounds = array<i64: 1, 8, 128>}]} {
    %c0 = arith.constant 0 : index
    %c0_0 = arith.constant 0 : index
    %c0_1 = arith.constant 0 : index
    %0 = vector.load %arg2[%c0, %c0_0, %c0_1] : memref<1x8x32xf32, #tpu.memory_space<vmem>>, vector<1x8x32xf32>
    %1 = vector.shape_cast %0 : vector<1x8x32xf32> to vector<8x32xf32>
    %cst = arith.constant dense<0.000000e+00> : vector<8xf32>
    %2 = vector.multi_reduction <add>, %1, %cst [1] : vector<8x32xf32> to vector<8xf32>
    %3 = vector.shape_cast %2 : vector<8xf32> to vector<8x1xf32>
    %4 = arith.mulf %1, %1 : vector<8x32xf32>
    %cst_2 = arith.constant dense<0.000000e+00> : vector<8xf32>
    %5 = vector.multi_reduction <add>, %4, %cst_2 [1] : vector<8x32xf32> to vector<8xf32>
    %6 = vector.shape_cast %5 : vector<8xf32> to vector<8x1xf32>
    %cst_3 = arith.constant 3.125000e-02 : f32
    %7 = vector.broadcast %cst_3 : f32 to vector<8x1xf32>
    %8 = arith.mulf %3, %7 : vector<8x1xf32>
    %cst_4 = arith.constant 3.125000e-02 : f32
    %9 = vector.broadcast %cst_4 : f32 to vector<8x1xf32>
    %10 = arith.mulf %6, %9 : vector<8x1xf32>
    %11 = arith.mulf %8, %8 : vector<8x1xf32>
    %12 = arith.subf %10, %11 : vector<8x1xf32>
    %cst_5 = arith.constant 0.000000e+00 : f32
    %13 = vector.broadcast %cst_5 : f32 to vector<8x1xf32>
    %14 = arith.maximumf %12, %13 : vector<8x1xf32>
    %15 = vector.broadcast %8 : vector<8x1xf32> to vector<8x32xf32>
    %16 = arith.subf %1, %15 : vector<8x32xf32>
    %cst_6 = arith.constant 9.99999997E-7 : f32
    %17 = vector.broadcast %cst_6 : f32 to vector<8x1xf32>
    %18 = arith.addf %14, %17 : vector<8x1xf32>
    %19 = math.rsqrt %18 : vector<8x1xf32>
    %20 = vector.broadcast %19 : vector<8x1xf32> to vector<8x32xf32>
    %21 = arith.mulf %16, %20 : vector<8x32xf32>
    %c0_7 = arith.constant 0 : index
    %c0_8 = arith.constant 0 : index
    %c0_9 = arith.constant 0 : index
    %22 = vector.load %arg4[%c0_7, %c0_8, %c0_9] : memref<1x1x32xf32, #tpu.memory_space<vmem>>, vector<1x1x32xf32>
    %23 = vector.shape_cast %22 : vector<1x1x32xf32> to vector<1x32xf32>
    %24 = vector.broadcast %23 : vector<1x32xf32> to vector<8x32xf32>
    %25 = arith.mulf %21, %24 : vector<8x32xf32>
    %c0_10 = arith.constant 0 : index
    %c0_11 = arith.constant 0 : index
    %c0_12 = arith.constant 0 : index
    %26 = vector.load %arg3[%c0_10, %c0_11, %c0_12] : memref<1x1x32xf32, #tpu.memory_space<vmem>>, vector<1x1x32xf32>
    %27 = vector.shape_cast %26 : vector<1x1x32xf32> to vector<1x32xf32>
    %28 = vector.broadcast %27 : vector<1x32xf32> to vector<8x32xf32>
    %29 = arith.addf %25, %28 : vector<8x32xf32>
    %c0_13 = arith.constant 0 : index
    %c0_14 = arith.constant 0 : index
    %30 = vector.load %arg5[%c0_13, %c0_14] : memref<32x128xf32, #tpu.memory_space<vmem>>, vector<32x128xf32>
    %cst_15 = arith.constant dense<0.000000e+00> : vector<8x128xf32>
    %31 = tpu.matmul %29, %30, %cst_15 {dimension_numbers = #tpu.dot_dimension_numbers<[1], [0], [0], [1], [0, 0, 1, 1], [], []>} : vector<8x32xf32>, vector<32x128xf32>, vector<8x128xf32> -> vector<8x128xf32>
    %c0_16 = arith.constant 0 : index
    %c0_17 = arith.constant 0 : index
    %32 = vector.load %arg6[%c0_16, %c0_17] : memref<1x128xf32, #tpu.memory_space<vmem>>, vector<1x128xf32>
    %33 = vector.broadcast %32 : vector<1x128xf32> to vector<8x128xf32>
    %34 = arith.addf %31, %33 : vector<8x128xf32>
    %c0_18 = arith.constant 0 : index
    %c0_19 = arith.constant 0 : index
    %c0_20 = arith.constant 0 : index
    %35 = vector.load %arg7[%c0_18, %c0_19, %c0_20] : memref<1x8x128xf32, #tpu.memory_space<vmem>>, vector<1x8x128xf32>
    %36 = vector.shape_cast %35 : vector<1x8x128xf32> to vector<8x128xf32>
    %37 = vector.shape_cast %34 : vector<8x128xf32> to vector<1x8x128xf32>
    tpu.vector_store %arg7[%c0_18, %c0_19, %c0_20], %37 {strides = array<i32>} : memref<1x8x128xf32, #tpu.memory_space<vmem>>, vector<1x8x128xf32>,
    return
  }
  func.func @transform_0(%arg0: i32, %arg1: i32) -> (i32, i32, i32) {
    %c0_i32 = arith.constant 0 : i32
    %c0_i32_0 = arith.constant 0 : i32
    return %arg0, %arg1, %c0_i32 : i32, i32, i32
  }
  func.func @transform_1(%arg0: i32, %arg1: i32) -> (i32, i32, i32) {
    %c0_i32 = arith.constant 0 : i32
    %c0_i32_0 = arith.constant 0 : i32
    %c0_i32_1 = arith.constant 0 : i32
    return %arg0, %c0_i32, %c0_i32_0 : i32, i32, i32
  }
  func.func @transform_2(%arg0: i32, %arg1: i32) -> (i32, i32, i32) {
    %c0_i32 = arith.constant 0 : i32
    %c0_i32_0 = arith.constant 0 : i32
    %c0_i32_1 = arith.constant 0 : i32
    return %arg0, %c0_i32, %c0_i32_0 : i32, i32, i32
  }
  func.func @transform_3(%arg0: i32, %arg1: i32) -> (i32, i32) {
    %c0_i32 = arith.constant 0 : i32
    %c0_i32_0 = arith.constant 0 : i32
    %c0_i32_1 = arith.constant 0 : i32
    return %c0_i32, %c0_i32_0 : i32, i32
  }
  func.func @transform_4(%arg0: i32, %arg1: i32) -> (i32, i32) {
    %c0_i32 = arith.constant 0 : i32
    %c0_i32_0 = arith.constant 0 : i32
    %c0_i32_1 = arith.constant 0 : i32
    return %c0_i32, %c0_i32_0 : i32, i32
  }
  func.func @transform_5(%arg0: i32, %arg1: i32) -> (i32, i32, i32) {
    %c0_i32 = arith.constant 0 : i32
    %c0_i32_0 = arith.constant 0 : i32
    return %arg0, %arg1, %c0_i32 : i32, i32, i32
  }
}

module attributes {stable_mosaic.version = 11 : i64} {
  func.func @_final_layer_kernel(%arg0: i32, %arg1: i32, %arg2: memref<1x8x32xf32, #tpu.memory_space<vmem>>, %arg3: memref<1x1x32xf32, #tpu.memory_space<vmem>>, %arg4: memref<1x1x32xf32, #tpu.memory_space<vmem>>, %arg5: memref<32x128xf32, #tpu.memory_space<vmem>>, %arg6: memref<1x128xf32, #tpu.memory_space<vmem>>, %arg7: memref<1x8x128xf32, #tpu.memory_space<vmem>>) attributes {dimension_semantics = [#tpu.dimension_semantics<parallel>, #tpu.dimension_semantics<parallel>], iteration_bounds = array<i64: 2, 1>, scalar_prefetch = 0 : i64, scratch_operands = 0 : i64, tpu.core_type = #tpu.core_type<tc>, window_params = [{transform_indices = @transform_0, window_bounds = array<i64: 1, 8, 32>}, {transform_indices = @transform_1, window_bounds = array<i64: 1, 1, 32>}, {transform_indices = @transform_2, window_bounds = array<i64: 1, 1, 32>}, {pipeline_mode = #tpu.pipeline_mode<synchronous>, transform_indices = @transform_3, window_bounds = array<i64: 32, 128>}, {pipeline_mode = #tpu.pipeline_mode<synchronous>, transform_indices = @transform_4, window_bounds = array<i64: 1, 128>}, {transform_indices = @transform_5, window_bounds = array<i64: 1, 8, 128>}]} {
    %c0 = arith.constant 0 : index
    %c0_0 = arith.constant 0 : index
    %c0_1 = arith.constant 0 : index
    %0 = vector.load %arg2[%c0, %c0_0, %c0_1] : memref<1x8x32xf32, #tpu.memory_space<vmem>>, vector<1x8x32xf32>
    %1 = vector.shape_cast %0 : vector<1x8x32xf32> to vector<8x32xf32>
    %cst = arith.constant dense<0.000000e+00> : vector<8xf32>
    %2 = vector.multi_reduction <add>, %1, %cst [1] : vector<8x32xf32> to vector<8xf32>
    %3 = vector.shape_cast %2 : vector<8xf32> to vector<8x1xf32>
    %4 = arith.mulf %1, %1 : vector<8x32xf32>
    %cst_2 = arith.constant dense<0.000000e+00> : vector<8xf32>
    %5 = vector.multi_reduction <add>, %4, %cst_2 [1] : vector<8x32xf32> to vector<8xf32>
    %6 = vector.shape_cast %5 : vector<8xf32> to vector<8x1xf32>
    %cst_3 = arith.constant 3.125000e-02 : f32
    %7 = vector.broadcast %cst_3 : f32 to vector<8x1xf32>
    %8 = arith.mulf %3, %7 : vector<8x1xf32>
    %cst_4 = arith.constant 3.125000e-02 : f32
    %9 = vector.broadcast %cst_4 : f32 to vector<8x1xf32>
    %10 = arith.mulf %6, %9 : vector<8x1xf32>
    %11 = arith.mulf %8, %8 : vector<8x1xf32>
    %12 = arith.subf %10, %11 : vector<8x1xf32>
    %cst_5 = arith.constant 0.000000e+00 : f32
    %13 = vector.broadcast %cst_5 : f32 to vector<8x1xf32>
    %14 = arith.maximumf %12, %13 : vector<8x1xf32>
    %15 = vector.broadcast %8 : vector<8x1xf32> to vector<8x32xf32>
    %16 = arith.subf %1, %15 : vector<8x32xf32>
    %cst_6 = arith.constant 9.99999997E-7 : f32
    %17 = vector.broadcast %cst_6 : f32 to vector<8x1xf32>
    %18 = arith.addf %14, %17 : vector<8x1xf32>
    %19 = math.rsqrt %18 : vector<8x1xf32>
    %20 = vector.broadcast %19 : vector<8x1xf32> to vector<8x32xf32>
    %21 = arith.mulf %16, %20 : vector<8x32xf32>
    %c0_7 = arith.constant 0 : index
    %c0_8 = arith.constant 0 : index
    %c0_9 = arith.constant 0 : index
    %22 = vector.load %arg4[%c0_7, %c0_8, %c0_9] : memref<1x1x32xf32, #tpu.memory_space<vmem>>, vector<1x1x32xf32>
    %23 = vector.shape_cast %22 : vector<1x1x32xf32> to vector<1x32xf32>
    %24 = vector.broadcast %23 : vector<1x32xf32> to vector<8x32xf32>
    %25 = arith.mulf %21, %24 : vector<8x32xf32>
    %c0_10 = arith.constant 0 : index
    %c0_11 = arith.constant 0 : index
    %c0_12 = arith.constant 0 : index
    %26 = vector.load %arg3[%c0_10, %c0_11, %c0_12] : memref<1x1x32xf32, #tpu.memory_space<vmem>>, vector<1x1x32xf32>
    %27 = vector.shape_cast %26 : vector<1x1x32xf32> to vector<1x32xf32>
    %28 = vector.broadcast %27 : vector<1x32xf32> to vector<8x32xf32>
    %29 = arith.addf %25, %28 : vector<8x32xf32>
    %c0_13 = arith.constant 0 : index
    %c0_14 = arith.constant 0 : index
    %30 = vector.load %arg5[%c0_13, %c0_14] : memref<32x128xf32, #tpu.memory_space<vmem>>, vector<32x128xf32>
    %cst_15 = arith.constant dense<0.000000e+00> : vector<8x128xf32>
    %31 = tpu.matmul %29, %30, %cst_15 {dimension_numbers = #tpu.dot_dimension_numbers<[1], [0], [0], [1], [0, 0, 1, 1], [], []>} : vector<8x32xf32>, vector<32x128xf32>, vector<8x128xf32> -> vector<8x128xf32>
    %c0_16 = arith.constant 0 : index
    %c0_17 = arith.constant 0 : index
    %32 = vector.load %arg6[%c0_16, %c0_17] : memref<1x128xf32, #tpu.memory_space<vmem>>, vector<1x128xf32>
    %33 = vector.broadcast %32 : vector<1x128xf32> to vector<8x128xf32>
    %34 = arith.addf %31, %33 : vector<8x128xf32>
    %c0_18 = arith.constant 0 : index
    %c0_19 = arith.constant 0 : index
    %c0_20 = arith.constant 0 : index
    %35 = vector.load %arg7[%c0_18, %c0_19, %c0_20] : memref<1x8x128xf32, #tpu.memory_space<vmem>>, vector<1x8x128xf32>
    %36 = vector.shape_cast %35 : vector<1x8x128xf32> to vector<8x128xf32>
    %37 = vector.shape_cast %34 : vector<8x128xf32> to vector<1x8x128xf32>
    tpu.vector_store %arg7[%c0_18, %c0_19, %c0_20], %37 {strides = array<i32>} : memref<1x8x128xf32, #tpu.memory_space<vmem>>, vector<1x8x128xf32>,
    return
  }
  func.func @transform_0(%arg0: i32, %arg1: i32) -> (i32, i32, i32) {
    %c0_i32 = arith.constant 0 : i32
    %c0_i32_0 = arith.constant 0 : i32
    return %arg0, %arg1, %c0_i32 : i32, i32, i32
  }
  func.func @transform_1(%arg0: i32, %arg1: i32) -> (i32, i32, i32) {
    %c0_i32 = arith.constant 0 : i32
    %c0_i32_0 = arith.constant 0 : i32
    %c0_i32_1 = arith.constant 0 : i32
    return %arg0, %c0_i32, %c0_i32_0 : i32, i32, i32
  }
  func.func @transform_2(%arg0: i32, %arg1: i32) -> (i32, i32, i32) {
    %c0_i32 = arith.constant 0 : i32
    %c0_i32_0 = arith.constant 0 : i32
    %c0_i32_1 = arith.constant 0 : i32
    return %arg0, %c0_i32, %c0_i32_0 : i32, i32, i32
  }
  func.func @transform_3(%arg0: i32, %arg1: i32) -> (i32, i32) {
    %c0_i32 = arith.constant 0 : i32
    %c0_i32_0 = arith.constant 0 : i32
    %c0_i32_1 = arith.constant 0 : i32
    return %c0_i32, %c0_i32_0 : i32, i32
  }
  func.func @transform_4(%arg0: i32, %arg1: i32) -> (i32, i32) {
    %c0_i32 = arith.constant 0 : i32
    %c0_i32_0 = arith.constant 0 : i32
    %c0_i32_1 = arith.constant 0 : i32
    return %c0_i32, %c0_i32_0 : i32, i32
  }
  func.func @transform_5(%arg0: i32, %arg1: i32) -> (i32, i32, i32) {
    %c0_i32 = arith.constant 0 : i32
    %c0_i32_0 = arith.constant 0 : i32
    return %arg0, %arg1, %c0_i32 : i32, i32, i32
  }
}

</mosaic_0001>

<bundles_post_ra>
// kernel: tpu_custom_call.1
= control target key start
LH: loop header
LB: loop body
LE: loop exit
PB: predicated region body
PF: predicated region fallthrough
CT: control target
= control target key end

     0   :  { %10 = vsyncpa [#allocation3], 0  ;;  %s1085_s0 = inlined_call_operand.hbm [shape: f32[2,8,32], index: 0, kind: input, shape index: {}]   ;;  %s1086_s1 = inlined_call_operand.vmem [shape: f32[2,1,32], index: 1, kind: input, shape index: {}]   ;;  %s1087_s2 = inlined_call_operand.vmem [shape: f32[2,1,32], index: 2, kind: input, shape index: {}]   ;;  %s1088_s3 = inlined_call_operand.hbm [shape: f32[32,128], index: 3, kind: input, shape index: {}]   ;;  %s1089_s4 = inlined_call_operand.vmem [shape: f32[1,128], index: 4, kind: input, shape index: {}]   ;;  %s1090_s5 = inlined_call_operand.hbm [shape: f32[2,8,128], index: 5, kind: output, shape index: {}]  }
   0x1   :  { %12 = vsyncpa [#allocation3 + $0x1], 0 }
   0x2   :  { %13 = vsyncpa [#allocation6], 0 }
   0x3   :  { %14 = vsyncpa [#allocation4], 0 }
   0x4   :  { %16 = vsyncpa [#allocation4 + $0x1], 0  ;;  %s853_s18 = smov 0   ;;  %s855_s19 = smov 0  }
   0x5   :  { %s857_s20 = smov 0   ;;  %s859_s21 = smov 0  }
   0x6   :  { %s861_s22 = smov 0   ;;  %s863_s23 = smov 0  }
   0x7 LB: > { %s548_s24 = sadd.s32 4294967295, %s813_s23   ;;  %s549_s25 = sadd.s32 4294967294, %s813_s23   ;;  %s813_s23 = sphi %s863_s23, %s22_s23   ;;  %s809_s22 = sphi %s861_s22, %s1114_s22   ;;  %s805_s21 = sphi %s859_s21, %s1113_s21   ;;  %s801_s20 = sphi %s857_s20, %s1112_s20   ;;  %s797_s19 = sphi %s855_s19, %s1111_s19   ;;  %s793_s18 = sphi %s853_s18, %s1110_s18  }
   0x8   : > { %p56_p0 = scmp.ne.s32.totalorder %s797_s19, %s793_s18  ;;  %p887_p1 = scmp.eq.s32.totalorder %s548_s24, 0 }
   0x9   : > { %p891_p2 = scmp.eq.s32.totalorder %s548_s24, 1  ;;  %p182_p3 = scmp.eq.s32.totalorder %s549_s25, 1 }
   0xa   : > { %s1095_s26 = scalar_select %p887_p1, 1, 0 }
   0xb   : > { %s1096_s27 = scalar_select %p891_p2, 1, 0 }
   0xc   : > { %p897_p4 = por %p887_p1, %p56_p0  ;;  %p550_p5 = scmp.ge.s32.totalorder %s813_s23, 1 }
   0xd   : > { %p902_p6 = por %p182_p3, %p56_p0  ;;  %p189_p7 = scmp.lt.s32.totalorder %s813_s23, 3 }
   0xe   : > { %s1097_s28 = scalar_select %p897_p4, 1, 0 }
   0xf   : > { %s1098_s29 = scalar_select %p902_p6, 1, 0 }
  0x10   : > { %p907_p8 = pnand %p550_p5, %p189_p7  ;;  %s815_s6 = smov [#allocation5]  }
  0x11   : > { %s213_s7 = sshll.u32 %s815_s6, 4  ;;  %s34_s9 = sadd.s32 1, %s809_s22  ;;  %s214_s7 = int_to_ptr.vmem [resolvable:$true] %s213_s7 }
  0x12   : > { %s1099_s30 = scalar_select %p907_p8, 1, 0 }
  0x13   : > { %p597_p9 = pneg %p907_p8  ;;  %s669_s12 = scalar_lea.hbm %s1088_s3, 512 }
  0x14   : > { %p670_p12 = scmp.ne.s32.totalorder %s1088_s3, %s669_s12  ;;  %p676_p5 = scmp.lt.u32.totalorder %s669_s12, %s1088_s3 }
  0x15   : > { %p916_p11 = pnand %p597_p9, %p887_p1 }
  0x17   : > { %p671_p13 = pneg %p916_p11 }
  0x19   : > { %p672_p0 = pnand %p671_p13, %p670_p12 }
  0x1b   : > { %p673_p3 = pneg %p672_p0 }
  0x1d   : > { %p678_p7 = pnand %p676_p5, %p673_p3 }
  0x1f   : > { %681 = shalt.err (!%p678_p7)
}
  0x20   : > { %s682_s17 = scalar_lea.vmem %s214_s7, 512  ;;  %p690_p1 = scmp.lt.s32.totalorder %s214_s7, %s214_s7 }
  0x21   : > { %p683_p9 = scmp.ne.s32.totalorder %s214_s7, %s682_s17  ;;  %p691_p4 = scmp.lt.s32.totalorder %s682_s17, %s682_s17 }
  0x23   : > { %p685_p10 = pnand %p683_p9, %p671_p13  ;;  %p692_p8 = por %p691_p4, %p690_p1 }
  0x25   : > { %p686_p6 = pneg %p685_p10 }
  0x27   : > { %p693_p2 = pnand %p692_p8, %p686_p6 }
  0x29   : > { %696 = shalt.err (!%p693_p2)
}
  0x2a   : > { %s816_s24 = smov 128   ;;  %s817_s25 = smov 8  }
  0x2b   : > { %600 = dma.hbm_to_vmem [thread:$0]  (!%p916_p11), %s1088_s3, 512, %s214_s7, [#allocation6], %s816_s24, %s816_s24, %s817_s25  }
  0x2c   : > { %p36_p1 = scmp.ge.s32.totalorder %s34_s9, 2  ;;  %s43_s11 = sadd.s32 1, %s801_s20 }
  0x2d   : > { %p50_p2 = scmp.ne.s32.totalorder %s801_s20, %s797_s19  ;;  %p51_p4 = scmp.eq.s32.totalorder %s813_s23, 0 }
  0x2e   : > { %s1116_s9 = smov (%p36_p1, %s34_s9), 0  ;;  %p1102_p8 = scmp.ne.s32.totalorder %s1096_s27, 0 }
  0x2f   : > { %p943_p6 = por %p51_p4, %p50_p2  ;;  %s38_s8 = ssub.s32 %s809_s22, %s1116_s9 }
  0x30   : > { %p949_p10 = por %p1102_p8, %p50_p2  ;;  %p610_p12 = scmp.lt.s32.totalorder %s813_s23, 2 }
  0x31   : > { %p41_p11 = scmp.eq.s32.totalorder %s38_s8, 0  ;;  %s230_s7 = sand.u32 1, %s801_s20  }
  0x32   : > { %s553_s14 = sshll.u32 %s230_s7, 3  ;;  %s554_s16 = sshll.u32 %s809_s22, 7 }
  0x33   : > { %s958_s15 = scalar_select %p41_p11, %s801_s20, %s43_s11  }
  0x34   : > { %s964_s25 = scalar_lea.hbm %s1085_s0, %s554_s16  ;;  %s234_s27 = scalar_lea.vmem [#allocation2], %s553_s14 }
  0x35   : > { %s242_s6 = sshll.u32 %s234_s27, 4  ;;  %p970_p13 = pnand %p610_p12, %p943_p6  ;;  %s966_s6 = int_to_ptr.vmem [resolvable:$true] %s242_s6 }
  0x36   : > { %s231_s11 = scalar_lea.sflag [#allocation3], %s230_s7  ;;  %s697_s8 = scalar_lea.hbm %s964_s25, 128 }
  0x37   : > { %p698_p0 = scmp.ne.s32.totalorder %s964_s25, %s697_s8  ;;  %p699_p3 = pneg %p970_p13 }
  0x38   : > { %s702_s17 = scalar_lea.hbm %s1085_s0, 256  ;;  %p703_p9 = scmp.lt.u32.totalorder %s964_s25, %s1085_s0 }
  0x39   : > { %p700_p5 = pnand %p699_p3, %p698_p0  ;;  %p704_p1 = scmp.lt.u32.totalorder %s702_s17, %s697_s8 }
  0x3a   : > { %p706_p4 = scmp.lt.u32.totalorder %s697_s8, %s964_s25 }
  0x3b   : > { %p701_p7 = pneg %p700_p5  ;;  %p705_p2 = por %p704_p1, %p703_p9 }
  0x3d   : > { %p707_p6 = por %p706_p4, %p705_p2 }
  0x3f   : > { %p708_p8 = pnand %p707_p6, %p701_p7 }
  0x41   : > { %711 = shalt.err (!%p708_p8)
}
  0x42   : > { %s712_s7 = scalar_lea.vmem %s966_s6, 128  ;;  %s818_s27 = smov [#allocation2]  }
  0x43   : > { %p713_p12 = scmp.ne.s32.totalorder %s966_s6, %s712_s7  ;;  %s717_s14 = sshll.u32 %s818_s27, 4  ;;  %s718_s14 = int_to_ptr.vmem [resolvable:$false] %s717_s14 }
  0x44   : > { %s719_s16 = scalar_lea.vmem %s718_s14, 256  ;;  %p720_p5 = scmp.lt.s32.totalorder %s966_s6, %s718_s14 }
  0x45   : > { %p715_p11 = pnand %p713_p12, %p699_p3  ;;  %p721_p9 = scmp.lt.s32.totalorder %s719_s16, %s712_s7 }
  0x47   : > { %p716_p0 = pneg %p715_p11  ;;  %p722_p1 = por %p721_p9, %p720_p5 }
  0x49   : > { %p723_p2 = pnand %p722_p1, %p716_p0 }
  0x4b   : > { %726 = shalt.err (!%p723_p2)
}
  0x4c   : > { %604 = dma.hbm_to_vmem [thread:$0]  (!%p970_p13), %s964_s25, 128, %s966_s6, %s231_s11  }
  0x4d   : > { %p1105_p7 = scmp.ne.s32.totalorder %s1099_s30, 0 }
  0x4e   : > { %s1002_s8 = sand.u32 (!%p1105_p7), 1, %s797_s19   ;;  %p1106_p3 = scmp.ne.s32.totalorder (!%p1105_p7), %s1097_s28, 0 }
  0x4f   : > { %251 = sbr.rel (%p1105_p7) target bundleno = 491 (0x1eb), region = 40  ;;  %s556_s17 = sshll.u32 (!%p1105_p7), %s1002_s8, 3 }
  0x50   : > { %s254_s12 = scalar_lea.sflag (!%p1105_p7), [#allocation3], %s1002_s8  ;;  %s257_s24 = scalar_lea.vmem (!%p1105_p7), [#allocation2], %s556_s17 }
  0x56   : > { %780 = dma.done.wait (%p1106_p3), %s254_s12, 128  }
  0x57   : > { %782 = vsyncadd (%p1106_p3), %s254_s12, 4294967168  ;;  %p1107_p13 = scmp.ne.s32.totalorder %s1095_s26, 0 }
  0x59   : > { %784 = dma.done.wait (%p1107_p13), [#allocation6], 512  }
  0x5a   : > { %786 = vsyncadd (%p1107_p13), [#allocation6], 4294966784  ;;  %vm301_vm0 = vcmask 261120   ;;  %v300_v0 = vld [vmem:[%s257_s24] sm:$0xff]  ;;  %v334_v4 = vld [vmem:[#allocation5] sm:$0xff]  ;;  %v819_v7 = vmov 0.0|0.0  }
  0x5b   : > { %v302_v1 = vsel %vm301_vm0, %v300_v0, 0.0  ;;  %v305_v2 = vmul.f32 %v300_v0, %v300_v0  ;;  %v335_v5 = vld [vmem:[#allocation5 + $0x8] sm:$0xff]  ;;  %v336_v6 = vld [vmem:[#allocation5 + $0x10] sm:$0xff]  ;;  %583 = vmatprep.subr.bf16.mxu0 %v819_v7  ;;  %v337_v9 = vld [vmem:[#allocation5 + $0x18] sm:$0xff]  ;;  %vm820_vm1 = vmmov 0   ;;  %v821_v10 = vmov 0.0  }
  0x5c   : > { %303 = vadd.xlane.f32.xlu0 %v302_v1  ;;  %v584_v8 = vpack.c.bf16 %v335_v5, %v334_v4  ;;  %580 = vmatprep.mubr.msk.f32.mxu0 %vm820_vm1, %v821_v10  ;;  %v587_v11 = vpack.c.bf16 %v337_v9, %v336_v6  ;;  %p294_p4 = scmp.lt.s32.totalorder %s805_s21, 1  ;;  %v561_v27 = vld [vmem:[%s1089_s4] ss:$0 sm:$0xff]  ;;  %s564_s14 = sshll.u32 %s805_s21, 7 }
  0x5d   : > { %v306_v3 = vsel %vm301_vm0, %v305_v2, 0.0  ;;  %s293_s16 = scalar_lea.vmem [#allocation7], %s556_s17  ;;  %s1036_s28 = scalar_lea.hbm %s1090_s5, %s564_s14 }
  0x5e   : > { %585 = vmatpush3.bf16.msra.mxu0 %v584_v8  ;;  %s295_s26 = scalar_select %p294_p4, %s805_s21, 1 }
  0x5f   : > { %586 = vmatprep.subr.bf16.mxu0 %v819_v7  ;;  %s434_s12 = sshll.u32 %s293_s16, 4  ;;  %s420_s30 = scalar_lea.sflag [#allocation4], %s1002_s8  ;;  %s1038_s12 = int_to_ptr.vmem [resolvable:$true] %s434_s12 }
  0x60   : > { %307 = vadd.xlane.f32.xlu0 %v306_v3  ;;  %s299_s25 = scalar_lea.vmem %s1087_s2, %s295_s26  ;;  %s296_s11 = scalar_lea.vmem %s1086_s1, %s295_s26 }
  0x61   : > { %v559_v22 = vld [vmem:[%s299_s25] ss:$0 sm:$0xff]  ;;  %s727_s25 = scalar_lea.vmem %s1038_s12, 128  ;;  %s822_s21 = smov [#allocation7]  }
  0x62   : > { %588 = vmatpush3.bf16.msra.mxu0 %v587_v11  ;;  %v560_v24 = vld [vmem:[%s296_s11] ss:$0 sm:$0xff]  ;;  %p728_p6 = scmp.ne.s32.totalorder %s1038_s12, %s727_s25  ;;  %s731_s17 = sshll.u32 %s822_s21, 4  ;;  %s732_s17 = int_to_ptr.vmem [resolvable:$false] %s731_s17 }
  0x63   : > { %s733_s6 = scalar_lea.vmem %s732_s17, 256  ;;  %p734_p11 = scmp.lt.s32.totalorder %s1038_s12, %s732_s17 }
  0x64   : > { %p729_p8 = pnand %p728_p6, %p949_p10  ;;  %p735_p0 = scmp.lt.s32.totalorder %s733_s6, %s727_s25 }
  0x66   : > { %p730_p12 = pneg %p729_p8  ;;  %p736_p5 = por %p735_p0, %p734_p11 }
  0x68   : > { %p737_p9 = pnand %p736_p5, %p730_p12 }
  0xe9   : > { %v304_v12 = vpop.xlane.xlu0 %303 }
  0xea   : > { %v309_v13 = vmul.f32 0.03125, %v304_v12 }
  0xec   : > { %v311_v15 = vmul.f32 %v309_v13, %v309_v13  ;;  %v314_v20 = vsub.f32 %v300_v0, %v309_v13 }
  0xed   : > { %v308_v14 = vpop.xlane.xlu0 %307 }
  0xee   : > { %v310_v16 = vmul.f32 0.03125, %v308_v14 }
  0xf0   : > { %v312_v17 = vsub.f32 %v310_v16, %v311_v15 }
  0xf2   : > { %v313_v18 = vmax.f32 %v312_v17, 0.0 }
  0xf4   : > { %v315_v19 = vadd.f32 1e-06, %v313_v18 }
  0xf6   : > { %667 = vrsqrt.f32 %v315_v19 }
 0x100   : > { %v668_v21 = vpop.eup %667 }
 0x101   : > { %v317_v23 = vmul.f32 %v668_v21, %v314_v20 }
 0x103   : > { %v325_v25 = vmul.f32 %v559_v22, %v317_v23 }
 0x105   : > { %v333_v26 = vadd.f32 %v560_v24, %v325_v25 }
 0x107   : > { %581 = vmatmul.mubr.msk.f32.vlgmr.msra.gmra.mrb[0].mxu0 %vm301_vm0, %v333_v26 }
 0x1da   : > { %v414_v28 = vpop.f32.mrb[0].mxu0 }
 0x1db   : > { %v415_v29 = vadd.f32 %v561_v27, %v414_v28  ;;  %v582_v30 = vpop.f32.mrb[1].mxu0 }
 0x1dd   : > { %418 = vst [vmem:[%s293_s16] sm:$0xff] %v415_v29 }
 0x1de   : > { %740 = shalt.err (!%p737_p9)
}
 0x1df   : > { %s741_s8 = scalar_lea.hbm %s1036_s28, 128  ;;  %s745_s7 = scalar_lea.hbm %s1090_s5, 256 }
 0x1e0   : > { %p742_p1 = scmp.ne.s32.totalorder %s1036_s28, %s741_s8  ;;  %p746_p3 = scmp.lt.u32.totalorder %s1036_s28, %s1090_s5 }
 0x1e1   : > { %p747_p13 = scmp.lt.u32.totalorder %s745_s7, %s741_s8  ;;  %p749_p6 = scmp.lt.u32.totalorder %s741_s8, %s1036_s28 }
 0x1e2   : > { %p743_p2 = pnand %p742_p1, %p949_p10 }
 0x1e3   : > { %p748_p4 = por %p747_p13, %p746_p3 }
 0x1e4   : > { %p744_p7 = pneg %p743_p2 }
 0x1e5   : > { %p750_p8 = por %p749_p6, %p748_p4 }
 0x1e7   : > { %p751_p12 = pnand %p750_p8, %p744_p7 }
 0x1e9   : > { %754 = shalt.err (!%p751_p12)
}
 0x1ea   : > { %595 = dma.vmem_to_hbm [thread:$0]  (%p949_p10), %s1038_s12, 128, %s1036_s28, %s420_s30  }
 0x1eb PF: > { %s446_s16 = sand.u32 1, %s793_s18   ;;  %p1108_p11 = scmp.ne.s32.totalorder %s1098_s29, 0 }
 0x1ec   : > { %p1109_p0 = scmp.ge.s32.totalorder %s813_s23, 2  ;;  %s447_s24 = scalar_lea.sflag [#allocation4], %s446_s16 }
 0x1ee   : > { %p606_p5 = pnand %p1109_p0, %p1108_p11 }
 0x1f0   : > { %788 = dma.done.wait (!%p606_p5), %s447_s24, 128  }
 0x1f1   : > { %790 = vsyncadd (!%p606_p5), %s447_s24, 4294967168  ;;  %s22_s23 = sadd.s32 1, %s813_s23   ;;  %s1110_s18 = smov %s797_s19 }
 0x1f2   : > { %p19_p9 = scmp.ge.s32.totalorder %s22_s23, 4   ;;  %s1111_s19 = smov %s801_s20 }
 0x1f3   : > { %s1112_s20 = smov %s958_s15  ;;  %s1113_s21 = smov %s809_s22 }
 0x1f4   : > { %s1114_s22 = smov %s1116_s9  ;;  %21 = sbr.rel (!%p19_p9) target bundleno = 7 (0x7), region = 95 }
 0x1fb   :  { %452 = vsyncpa [#allocation3], 1 }
 0x1fc   :  { %454 = vsyncpa [#allocation3 + $0x1], 1 }
 0x1fd   :  { %455 = vsyncpa [#allocation6], 1 }
 0x1fe   :  { %456 = vsyncpa [#allocation4], 1 }
 0x1ff   :  { %458 = vsyncpa [#allocation4 + $0x1], 1 }

// kernel: tpu_custom_call.1
= control target key start
LH: loop header
LB: loop body
LE: loop exit
PB: predicated region body
PF: predicated region fallthrough
CT: control target
= control target key end

     0   :  { %10 = vsyncpa [#allocation3], 0  ;;  %s1079_s0 = inlined_call_operand.hbm [shape: f32[2,8,32], index: 0, kind: input, shape index: {}]   ;;  %s1080_s1 = inlined_call_operand.vmem [shape: f32[2,1,32], index: 1, kind: input, shape index: {}]   ;;  %s1081_s2 = inlined_call_operand.vmem [shape: f32[2,1,32], index: 2, kind: input, shape index: {}]   ;;  %s1082_s3 = inlined_call_operand.hbm [shape: f32[32,128], index: 3, kind: input, shape index: {}]   ;;  %s1083_s4 = inlined_call_operand.vmem [shape: f32[1,128], index: 4, kind: input, shape index: {}]   ;;  %s1084_s5 = inlined_call_operand.hbm [shape: f32[2,8,128], index: 5, kind: output, shape index: {}]  }
   0x1   :  { %12 = vsyncpa [#allocation3 + $0x1], 0 }
   0x2   :  { %13 = vsyncpa [#allocation6], 0 }
   0x3   :  { %14 = vsyncpa [#allocation4], 0 }
   0x4   :  { %16 = vsyncpa [#allocation4 + $0x1], 0  ;;  %s847_s18 = smov 0   ;;  %s849_s19 = smov 0  }
   0x5   :  { %s851_s20 = smov 0   ;;  %s853_s21 = smov 0  }
   0x6   :  { %s855_s22 = smov 0   ;;  %s857_s23 = smov 0  }
   0x7 LB: > { %s542_s24 = sadd.s32 4294967295, %s807_s23   ;;  %s543_s25 = sadd.s32 4294967294, %s807_s23   ;;  %s807_s23 = sphi %s857_s23, %s22_s23   ;;  %s803_s22 = sphi %s855_s22, %s1108_s22   ;;  %s799_s21 = sphi %s853_s21, %s1107_s21   ;;  %s795_s20 = sphi %s851_s20, %s1106_s20   ;;  %s791_s19 = sphi %s849_s19, %s1105_s19   ;;  %s787_s18 = sphi %s847_s18, %s1104_s18  }
   0x8   : > { %p56_p0 = scmp.ne.s32.totalorder %s791_s19, %s787_s18  ;;  %p881_p1 = scmp.eq.s32.totalorder %s542_s24, 0 }
   0x9   : > { %p885_p2 = scmp.eq.s32.totalorder %s542_s24, 1  ;;  %p182_p3 = scmp.eq.s32.totalorder %s543_s25, 1 }
   0xa   : > { %s1089_s26 = scalar_select %p881_p1, 1, 0 }
   0xb   : > { %s1090_s27 = scalar_select %p885_p2, 1, 0 }
   0xc   : > { %p891_p4 = por %p881_p1, %p56_p0  ;;  %p544_p5 = scmp.ge.s32.totalorder %s807_s23, 1 }
   0xd   : > { %p896_p6 = por %p182_p3, %p56_p0  ;;  %p189_p7 = scmp.lt.s32.totalorder %s807_s23, 3 }
   0xe   : > { %s1091_s28 = scalar_select %p891_p4, 1, 0 }
   0xf   : > { %s1092_s29 = scalar_select %p896_p6, 1, 0 }
  0x10   : > { %p901_p8 = pnand %p544_p5, %p189_p7  ;;  %s809_s6 = smov [#allocation5]  }
  0x11   : > { %s201_s7 = sshll.u32 %s809_s6, 4  ;;  %s34_s9 = sadd.s32 1, %s803_s22  ;;  %s202_s7 = int_to_ptr.vmem [resolvable:$true] %s201_s7 }
  0x12   : > { %s1093_s30 = scalar_select %p901_p8, 1, 0 }
  0x13   : > { %p591_p9 = pneg %p901_p8  ;;  %s663_s12 = scalar_lea.hbm %s1082_s3, 512 }
  0x14   : > { %p664_p12 = scmp.ne.s32.totalorder %s1082_s3, %s663_s12  ;;  %p670_p5 = scmp.lt.u32.totalorder %s663_s12, %s1082_s3 }
  0x15   : > { %p910_p11 = pnand %p591_p9, %p881_p1 }
  0x17   : > { %p665_p13 = pneg %p910_p11 }
  0x19   : > { %p666_p0 = pnand %p665_p13, %p664_p12 }
  0x1b   : > { %p667_p3 = pneg %p666_p0 }
  0x1d   : > { %p672_p7 = pnand %p670_p5, %p667_p3 }
  0x1f   : > { %675 = shalt.err (!%p672_p7)
}
  0x20   : > { %s676_s17 = scalar_lea.vmem %s202_s7, 512  ;;  %p684_p1 = scmp.lt.s32.totalorder %s202_s7, %s202_s7 }
  0x21   : > { %p677_p9 = scmp.ne.s32.totalorder %s202_s7, %s676_s17  ;;  %p685_p4 = scmp.lt.s32.totalorder %s676_s17, %s676_s17 }
  0x23   : > { %p679_p10 = pnand %p677_p9, %p665_p13  ;;  %p686_p8 = por %p685_p4, %p684_p1 }
  0x25   : > { %p680_p6 = pneg %p679_p10 }
  0x27   : > { %p687_p2 = pnand %p686_p8, %p680_p6 }
  0x29   : > { %690 = shalt.err (!%p687_p2)
}
  0x2a   : > { %s810_s24 = smov 128   ;;  %s811_s25 = smov 8  }
  0x2b   : > { %594 = dma.hbm_to_vmem [thread:$0]  (!%p910_p11), %s1082_s3, 512, %s202_s7, [#allocation6], %s810_s24, %s810_s24, %s811_s25  }
  0x2c   : > { %p36_p1 = scmp.ge.s32.totalorder %s34_s9, 2  ;;  %s43_s11 = sadd.s32 1, %s795_s20 }
  0x2d   : > { %p50_p2 = scmp.ne.s32.totalorder %s795_s20, %s791_s19  ;;  %p51_p4 = scmp.eq.s32.totalorder %s807_s23, 0 }
  0x2e   : > { %s1110_s9 = smov (%p36_p1, %s34_s9), 0  ;;  %p1096_p8 = scmp.ne.s32.totalorder %s1090_s27, 0 }
  0x2f   : > { %p937_p6 = por %p51_p4, %p50_p2  ;;  %s38_s8 = ssub.s32 %s803_s22, %s1110_s9 }
  0x30   : > { %p943_p10 = por %p1096_p8, %p50_p2  ;;  %p604_p12 = scmp.lt.s32.totalorder %s807_s23, 2 }
  0x31   : > { %p41_p11 = scmp.eq.s32.totalorder %s38_s8, 0  ;;  %s218_s7 = sand.u32 1, %s795_s20  }
  0x32   : > { %s547_s14 = sshll.u32 %s218_s7, 3  ;;  %s548_s16 = sshll.u32 %s803_s22, 7 }
  0x33   : > { %s952_s15 = scalar_select %p41_p11, %s795_s20, %s43_s11  }
  0x34   : > { %s958_s25 = scalar_lea.hbm %s1079_s0, %s548_s16  ;;  %s222_s27 = scalar_lea.vmem [#allocation2], %s547_s14 }
  0x35   : > { %s230_s6 = sshll.u32 %s222_s27, 4  ;;  %p964_p13 = pnand %p604_p12, %p937_p6  ;;  %s960_s6 = int_to_ptr.vmem [resolvable:$true] %s230_s6 }
  0x36   : > { %s219_s11 = scalar_lea.sflag [#allocation3], %s218_s7  ;;  %s691_s8 = scalar_lea.hbm %s958_s25, 128 }
  0x37   : > { %p692_p0 = scmp.ne.s32.totalorder %s958_s25, %s691_s8  ;;  %p693_p3 = pneg %p964_p13 }
  0x38   : > { %s696_s17 = scalar_lea.hbm %s1079_s0, 256  ;;  %p697_p9 = scmp.lt.u32.totalorder %s958_s25, %s1079_s0 }
  0x39   : > { %p694_p5 = pnand %p693_p3, %p692_p0  ;;  %p698_p1 = scmp.lt.u32.totalorder %s696_s17, %s691_s8 }
  0x3a   : > { %p700_p4 = scmp.lt.u32.totalorder %s691_s8, %s958_s25 }
  0x3b   : > { %p695_p7 = pneg %p694_p5  ;;  %p699_p2 = por %p698_p1, %p697_p9 }
  0x3d   : > { %p701_p6 = por %p700_p4, %p699_p2 }
  0x3f   : > { %p702_p8 = pnand %p701_p6, %p695_p7 }
  0x41   : > { %705 = shalt.err (!%p702_p8)
}
  0x42   : > { %s706_s7 = scalar_lea.vmem %s960_s6, 128  ;;  %s812_s27 = smov [#allocation2]  }
  0x43   : > { %p707_p12 = scmp.ne.s32.totalorder %s960_s6, %s706_s7  ;;  %s711_s14 = sshll.u32 %s812_s27, 4  ;;  %s712_s14 = int_to_ptr.vmem [resolvable:$false] %s711_s14 }
  0x44   : > { %s713_s16 = scalar_lea.vmem %s712_s14, 256  ;;  %p714_p5 = scmp.lt.s32.totalorder %s960_s6, %s712_s14 }
  0x45   : > { %p709_p11 = pnand %p707_p12, %p693_p3  ;;  %p715_p9 = scmp.lt.s32.totalorder %s713_s16, %s706_s7 }
  0x47   : > { %p710_p0 = pneg %p709_p11  ;;  %p716_p1 = por %p715_p9, %p714_p5 }
  0x49   : > { %p717_p2 = pnand %p716_p1, %p710_p0 }
  0x4b   : > { %720 = shalt.err (!%p717_p2)
}
  0x4c   : > { %598 = dma.hbm_to_vmem [thread:$0]  (!%p964_p13), %s958_s25, 128, %s960_s6, %s219_s11  }
  0x4d   : > { %p1099_p7 = scmp.ne.s32.totalorder %s1093_s30, 0 }
  0x4e   : > { %s996_s8 = sand.u32 (!%p1099_p7), 1, %s791_s19   ;;  %p1100_p3 = scmp.ne.s32.totalorder (!%p1099_p7), %s1091_s28, 0 }
  0x4f   : > { %251 = sbr.rel (%p1099_p7) target bundleno = 491 (0x1eb), region = 40  ;;  %s550_s17 = sshll.u32 (!%p1099_p7), %s996_s8, 3 }
  0x50   : > { %s254_s12 = scalar_lea.sflag (!%p1099_p7), [#allocation3], %s996_s8  ;;  %s257_s24 = scalar_lea.vmem (!%p1099_p7), [#allocation2], %s550_s17 }
  0x56   : > { %774 = dma.done.wait (%p1100_p3), %s254_s12, 128  }
  0x57   : > { %776 = vsyncadd (%p1100_p3), %s254_s12, 4294967168  ;;  %p1101_p13 = scmp.ne.s32.totalorder %s1089_s26, 0 }
  0x59   : > { %778 = dma.done.wait (%p1101_p13), [#allocation6], 512  }
  0x5a   : > { %780 = vsyncadd (%p1101_p13), [#allocation6], 4294966784  ;;  %vm301_vm0 = vcmask 261120   ;;  %v300_v0 = vld [vmem:[%s257_s24] sm:$0xff]  ;;  %v334_v4 = vld [vmem:[#allocation5] sm:$0xff]  ;;  %v813_v7 = vmov 0.0|0.0  }
  0x5b   : > { %v302_v1 = vsel %vm301_vm0, %v300_v0, 0.0  ;;  %v305_v2 = vmul.f32 %v300_v0, %v300_v0  ;;  %v335_v5 = vld [vmem:[#allocation5 + $0x8] sm:$0xff]  ;;  %v336_v6 = vld [vmem:[#allocation5 + $0x10] sm:$0xff]  ;;  %577 = vmatprep.subr.bf16.mxu0 %v813_v7  ;;  %v337_v9 = vld [vmem:[#allocation5 + $0x18] sm:$0xff]  ;;  %vm814_vm1 = vmmov 0   ;;  %v815_v10 = vmov 0.0  }
  0x5c   : > { %303 = vadd.xlane.f32.xlu0 %v302_v1  ;;  %v578_v8 = vpack.c.bf16 %v335_v5, %v334_v4  ;;  %574 = vmatprep.mubr.msk.f32.mxu0 %vm814_vm1, %v815_v10  ;;  %v581_v11 = vpack.c.bf16 %v337_v9, %v336_v6  ;;  %p294_p4 = scmp.lt.s32.totalorder %s799_s21, 1  ;;  %v555_v27 = vld [vmem:[%s1083_s4] ss:$0 sm:$0xff]  ;;  %s558_s14 = sshll.u32 %s799_s21, 7 }
  0x5d   : > { %v306_v3 = vsel %vm301_vm0, %v305_v2, 0.0  ;;  %s293_s16 = scalar_lea.vmem [#allocation7], %s550_s17  ;;  %s1030_s28 = scalar_lea.hbm %s1084_s5, %s558_s14 }
  0x5e   : > { %579 = vmatpush3.bf16.msra.mxu0 %v578_v8  ;;  %s295_s26 = scalar_select %p294_p4, %s799_s21, 1 }
  0x5f   : > { %580 = vmatprep.subr.bf16.mxu0 %v813_v7  ;;  %s434_s12 = sshll.u32 %s293_s16, 4  ;;  %s420_s30 = scalar_lea.sflag [#allocation4], %s996_s8  ;;  %s1032_s12 = int_to_ptr.vmem [resolvable:$true] %s434_s12 }
  0x60   : > { %307 = vadd.xlane.f32.xlu0 %v306_v3  ;;  %s299_s25 = scalar_lea.vmem %s1081_s2, %s295_s26  ;;  %s296_s11 = scalar_lea.vmem %s1080_s1, %s295_s26 }
  0x61   : > { %v553_v22 = vld [vmem:[%s299_s25] ss:$0 sm:$0xff]  ;;  %s721_s25 = scalar_lea.vmem %s1032_s12, 128  ;;  %s816_s21 = smov [#allocation7]  }
  0x62   : > { %582 = vmatpush3.bf16.msra.mxu0 %v581_v11  ;;  %v554_v24 = vld [vmem:[%s296_s11] ss:$0 sm:$0xff]  ;;  %p722_p6 = scmp.ne.s32.totalorder %s1032_s12, %s721_s25  ;;  %s725_s17 = sshll.u32 %s816_s21, 4  ;;  %s726_s17 = int_to_ptr.vmem [resolvable:$false] %s725_s17 }
  0x63   : > { %s727_s6 = scalar_lea.vmem %s726_s17, 256  ;;  %p728_p11 = scmp.lt.s32.totalorder %s1032_s12, %s726_s17 }
  0x64   : > { %p723_p8 = pnand %p722_p6, %p943_p10  ;;  %p729_p0 = scmp.lt.s32.totalorder %s727_s6, %s721_s25 }
  0x66   : > { %p724_p12 = pneg %p723_p8  ;;  %p730_p5 = por %p729_p0, %p728_p11 }
  0x68   : > { %p731_p9 = pnand %p730_p5, %p724_p12 }
  0xe9   : > { %v304_v12 = vpop.xlane.xlu0 %303 }
  0xea   : > { %v309_v13 = vmul.f32 0.03125, %v304_v12 }
  0xec   : > { %v311_v15 = vmul.f32 %v309_v13, %v309_v13  ;;  %v314_v20 = vsub.f32 %v300_v0, %v309_v13 }
  0xed   : > { %v308_v14 = vpop.xlane.xlu0 %307 }
  0xee   : > { %v310_v16 = vmul.f32 0.03125, %v308_v14 }
  0xf0   : > { %v312_v17 = vsub.f32 %v310_v16, %v311_v15 }
  0xf2   : > { %v313_v18 = vmax.f32 %v312_v17, 0.0 }
  0xf4   : > { %v315_v19 = vadd.f32 1e-06, %v313_v18 }
  0xf6   : > { %661 = vrsqrt.f32 %v315_v19 }
 0x100   : > { %v662_v21 = vpop.eup %661 }
 0x101   : > { %v317_v23 = vmul.f32 %v662_v21, %v314_v20 }
 0x103   : > { %v325_v25 = vmul.f32 %v553_v22, %v317_v23 }
 0x105   : > { %v333_v26 = vadd.f32 %v554_v24, %v325_v25 }
 0x107   : > { %575 = vmatmul.mubr.msk.f32.vlgmr.msra.gmra.mrb[0].mxu0 %vm301_vm0, %v333_v26 }
 0x1da   : > { %v414_v28 = vpop.f32.mrb[0].mxu0 }
 0x1db   : > { %v415_v29 = vadd.f32 %v555_v27, %v414_v28  ;;  %v576_v30 = vpop.f32.mrb[1].mxu0 }
 0x1dd   : > { %418 = vst [vmem:[%s293_s16] sm:$0xff] %v415_v29 }
 0x1de   : > { %734 = shalt.err (!%p731_p9)
}
 0x1df   : > { %s735_s8 = scalar_lea.hbm %s1030_s28, 128  ;;  %s739_s7 = scalar_lea.hbm %s1084_s5, 256 }
 0x1e0   : > { %p736_p1 = scmp.ne.s32.totalorder %s1030_s28, %s735_s8  ;;  %p740_p3 = scmp.lt.u32.totalorder %s1030_s28, %s1084_s5 }
 0x1e1   : > { %p741_p13 = scmp.lt.u32.totalorder %s739_s7, %s735_s8  ;;  %p743_p6 = scmp.lt.u32.totalorder %s735_s8, %s1030_s28 }
 0x1e2   : > { %p737_p2 = pnand %p736_p1, %p943_p10 }
 0x1e3   : > { %p742_p4 = por %p741_p13, %p740_p3 }
 0x1e4   : > { %p738_p7 = pneg %p737_p2 }
 0x1e5   : > { %p744_p8 = por %p743_p6, %p742_p4 }
 0x1e7   : > { %p745_p12 = pnand %p744_p8, %p738_p7 }
 0x1e9   : > { %748 = shalt.err (!%p745_p12)
}
 0x1ea   : > { %589 = dma.vmem_to_hbm [thread:$0]  (%p943_p10), %s1032_s12, 128, %s1030_s28, %s420_s30  }
 0x1eb PF: > { %s446_s16 = sand.u32 1, %s787_s18   ;;  %p1102_p11 = scmp.ne.s32.totalorder %s1092_s29, 0 }
 0x1ec   : > { %p1103_p0 = scmp.ge.s32.totalorder %s807_s23, 2  ;;  %s447_s24 = scalar_lea.sflag [#allocation4], %s446_s16 }
 0x1ee   : > { %p600_p5 = pnand %p1103_p0, %p1102_p11 }
 0x1f0   : > { %782 = dma.done.wait (!%p600_p5), %s447_s24, 128  }
 0x1f1   : > { %784 = vsyncadd (!%p600_p5), %s447_s24, 4294967168  ;;  %s22_s23 = sadd.s32 1, %s807_s23   ;;  %s1104_s18 = smov %s791_s19 }
 0x1f2   : > { %p19_p9 = scmp.ge.s32.totalorder %s22_s23, 4   ;;  %s1105_s19 = smov %s795_s20 }
 0x1f3   : > { %s1106_s20 = smov %s952_s15  ;;  %s1107_s21 = smov %s803_s22 }
 0x1f4   : > { %s1108_s22 = smov %s1110_s9  ;;  %21 = sbr.rel (!%p19_p9) target bundleno = 7 (0x7), region = 95 }
 0x1fb   :  { %452 = vsyncpa [#allocation3], 1 }
 0x1fc   :  { %454 = vsyncpa [#allocation3 + $0x1], 1 }
 0x1fd   :  { %455 = vsyncpa [#allocation6], 1 }
 0x1fe   :  { %456 = vsyncpa [#allocation4], 1 }
 0x1ff   :  { %458 = vsyncpa [#allocation4 + $0x1], 1 }

</bundles_post_ra>
